<compile_context>
chip_gen: v5e
topology: v5e:2x2
jax: 0.10.0
libtpu: 0.0.40
codegen_flags: <defaults>
</compile_context>

<pallas_src>
import jax
import jax.numpy as jnp
from jax.experimental import pallas as pl
from jax.experimental.pallas import tpu as pltpu

NEG_INF = -1e30
POOL_CHUNK = 8          # node (sublane) chunk size for the running-max pool


def _round_up(v, m):
    return ((v + m - 1) // m) * m


def _pad_to(x, shape):
    return jnp.pad(x, [(0, s - d) for s, d in zip(shape, x.shape)])


def espi_kernel(x_ref, a_ref, w_i_ref, w_h_ref, b_i_ref, b_h_ref,
                w_dense_ref, b_dense_ref, w_clf_ref, b_clf_ref, mask_ref,
                out_ref, h_ref):
    """One grid step == one GGNN layer; dense + pool + classifier run on the last step."""
    l = pl.program_id(0)
    H = x_ref.shape[1]                       # real hidden size (gates packed r|z|n along lanes)

    @pl.when(l == 0)
    def _init():
        h_ref[...] = x_ref[...]              # hidden state carried in VMEM scratch across layers

    h = h_ref[...]                           # (NP, H) f32
    h_bf = h.astype(jnp.bfloat16)            # bf16 MXU operands, f32 accumulation

    # message passing: x_neighbor[i] = sum_{j : j->i} h[j]  (dense adjacency matmul)
    xn = jnp.dot(a_ref[...], h_bf, preferred_element_type=jnp.float32)            # (NP, H)

    # fused + packed GRU gate projections (PyTorch GRUCell order r|z|n along lanes)
    gi = jnp.dot(xn.astype(jnp.bfloat16), w_i_ref[0],
                 preferred_element_type=jnp.float32) + b_i_ref[0]                 # (NP, GW)
    gh = jnp.dot(h_bf, w_h_ref[0],
                 preferred_element_type=jnp.float32) + b_h_ref[0]                 # (NP, GW)

    r = jax.nn.sigmoid(gi[:, 0 * H:1 * H] + gh[:, 0 * H:1 * H])
    z = jax.nn.sigmoid(gi[:, 1 * H:2 * H] + gh[:, 1 * H:2 * H])
    n = jnp.tanh(gi[:, 2 * H:3 * H] + r * gh[:, 2 * H:3 * H])
    h_new = (1.0 - z) * n + z * h
    h_ref[...] = h_new

    @pl.when(l == pl.num_programs(0) - 1)
    def _epilogue():
        # dropout = identity (eval); dense Linear(H, H)
        xd = jnp.dot(h_new.astype(jnp.bfloat16), w_dense_ref[...],
                     preferred_element_type=jnp.float32) + b_dense_ref[...]       # (NP, H)

        # global_max_pool as a chunked running max (bounded (GP, POOL_CHUNK, H) intermediate)
        mask = mask_ref[...]                                                      # (GP, NP)
        gp, np_nodes = mask.shape
        pooled = jnp.full((gp, H), NEG_INF, dtype=jnp.float32)
        for c in range(np_nodes // POOL_CHUNK):                                   # static, small
            xc = xd[c * POOL_CHUNK:(c + 1) * POOL_CHUNK, :]                       # (CHUNK, H)
            mc = mask[:, c * POOL_CHUNK:(c + 1) * POOL_CHUNK]                     # (GP, CHUNK)
            pooled = jnp.maximum(
                pooled, jnp.max(xc[None, :, :] + mc[:, :, None], axis=1))

        # dropout = identity; classifier Linear(H, 1) as VPU multiply + lane reduce
        logits = jnp.sum(pooled * w_clf_ref[...], axis=-1, keepdims=True) + b_clf_ref[...]
        probs = jax.nn.sigmoid(logits)                                            # (GP, 1)
        out_ref[...] = jnp.broadcast_to(probs, out_ref.shape)                     # lane-dense


def init_params(key, hidden_size, layer_num):
    """Deterministic init matching PyTorch shapes (weights stored transposed: x @ W)."""
    bound = 1.0 / jnp.sqrt(hidden_size)
    keys = jax.random.split(key, 20)
    u = lambda k, shape: jax.random.uniform(k, shape, jnp.float32, -bound, bound)
    L, H = layer_num, hidden_size
    return {
        "w_ir": u(keys[0], (L, H, H)), "w_iz": u(keys[1], (L, H, H)), "w_in": u(keys[2], (L, H, H)),
        "w_hr": u(keys[3], (L, H, H)), "w_hz": u(keys[4], (L, H, H)), "w_hn": u(keys[5], (L, H, H)),
        "b_ir": u(keys[6], (L, 1, H)), "b_iz": u(keys[7], (L, 1, H)), "b_in": u(keys[8], (L, 1, H)),
        "b_hr": u(keys[9], (L, 1, H)), "b_hz": u(keys[10], (L, 1, H)), "b_hn": u(keys[11], (L, 1, H)),
        "w_dense": u(keys[12], (H, H)), "b_dense": u(keys[13], (1, H)),
        "w_clf": u(keys[14], (H, 1)), "b_clf": u(keys[15], (1, 1)),
    }


def espi_forward(params, x, edge_index, batch, num_graphs):
    """Wrapper: pack/pad params, build dense adjacency + additive pool mask, run the kernel."""
    N, H = x.shape
    L = params["w_ir"].shape[0]
    GW = _round_up(3 * H, 128)              # packed gate lane width (r|z|n share one block)
    NP = _round_up(N, 8)                    # sublane-aligned node dim
    GP = _round_up(num_graphs, 8)           # sublane-aligned graph dim

    src, dst = edge_index[0], edge_index[1]
    # A[dst, src] += 1  ->  x_neighbor = A @ x ; bf16 is exact for small integer edge counts
    adj = (jnp.zeros((NP, NP), jnp.float32).at[dst, src].add(1.0)).astype(jnp.bfloat16)

    xp = _pad_to(x.astype(jnp.float32), (NP, H))

    def pack_w(names):                       # (L, H, 3H) -> padded to GW lanes, bf16
        w = jnp.concatenate([params[n] for n in names], axis=-1)
        return _pad_to(w, (L, H, GW)).astype(jnp.bfloat16)

    def pack_b(names):                       # (L, 1, 3H) -> padded to GW lanes, f32
        b = jnp.concatenate([params[n] for n in names], axis=-1)
        return _pad_to(b, (L, 1, GW))

    w_i = pack_w(("w_ir", "w_iz", "w_in"))
    w_h = pack_w(("w_hr", "w_hz", "w_hn"))
    b_i = pack_b(("b_ir", "b_iz", "b_in"))
    b_h = pack_b(("b_hr", "b_hz", "b_hn"))

    w_dense = params["w_dense"].astype(jnp.bfloat16)       # (H, H)
    b_dense = params["b_dense"]                            # (1, H) f32
    w_clf = params["w_clf"].T                              # (1, H) f32 (VPU lane reduce)
    b_clf = params["b_clf"]                                # (1, 1) f32

    # additive pooling mask: 0 where batch[n] == g, NEG_INF elsewhere (incl. padded nodes/graphs)
    batch_p = jnp.full((NP,), -1, dtype=batch.dtype).at[:N].set(batch)
    mask_add = jnp.where(batch_p[None, :] == jnp.arange(GP, dtype=batch.dtype)[:, None],
                         0.0, NEG_INF).astype(jnp.float32)                        # (GP, NP)

    inputs = (xp, adj, w_i, w_h, b_i, b_h, w_dense, b_dense, w_clf, b_clf, mask_add)

    # VMEM budget: resident buffers + one double-buffered layer of streamed gate weights.
    def _nb(a):
        return a.size * a.dtype.itemsize
    per_layer = (_nb(w_i) + _nb(w_h) + _nb(b_i) + _nb(b_h)) // L
    resident = (_nb(xp) + _nb(adj) + _nb(w_dense) + _nb(b_dense) + _nb(w_clf)
                + _nb(b_clf) + _nb(mask_add) + GP * 128 * 4 + NP * H * 4)
    vmem_limit = int(min(64 << 20, max(resident + 2 * per_layer + (4 << 20), 16 << 20)))

    const2 = lambda l: (0, 0)
    layer3 = lambda l: (l, 0, 0)
    in_specs = [
        pl.BlockSpec((NP, H), const2),          # x0 (initial node states)
        pl.BlockSpec((NP, NP), const2),         # adjacency (bf16), VMEM resident
        pl.BlockSpec((1, H, GW), layer3),       # fused/packed W_i, streamed per layer
        pl.BlockSpec((1, H, GW), layer3),       # fused/packed W_h, streamed per layer
        pl.BlockSpec((1, 1, GW), layer3),       # fused b_i
        pl.BlockSpec((1, 1, GW), layer3),       # fused b_h
        pl.BlockSpec((H, H), const2),           # dense weight
        pl.BlockSpec((1, H), const2),           # dense bias
        pl.BlockSpec((1, H), const2),           # classifier weight (row vector)
        pl.BlockSpec((1, 1), const2),           # classifier bias
        pl.BlockSpec((GP, NP), const2),         # additive pooling mask
    ]

    out = pl.pallas_call(
        espi_kernel,
        out_shape=jax.ShapeDtypeStruct((GP, 128), jnp.float32),
        grid=(L,),
        in_specs=in_specs,
        out_specs=pl.BlockSpec((GP, 128), const2),
        scratch_shapes=[pltpu.VMEM((NP, H), jnp.float32)],   # carried hidden state
        compiler_params=pltpu.CompilerParams(
            dimension_semantics=("arbitrary",),   # layers are sequential (carried state)
            vmem_limit_bytes=vmem_limit),
    )(*inputs)
    return out[:num_graphs, 0]   # .squeeze() -> (G,)


def espi_reference(params, x, edge_index, batch, num_graphs):
    """Pure-JAX f32 reference of the PyTorch forward (eval mode)."""
    src, dst = edge_index[0], edge_index[1]
    L = params["w_ir"].shape[0]
    h = x.astype(jnp.float32)
    for l in range(L):
        xn = jax.ops.segment_sum(h[src], dst, num_segments=h.shape[0])
        r = jax.nn.sigmoid(xn @ params["w_ir"][l] + params["b_ir"][l]
                           + h @ params["w_hr"][l] + params["b_hr"][l])
        z = jax.nn.sigmoid(xn @ params["w_iz"][l] + params["b_iz"][l]
                           + h @ params["w_hz"][l] + params["b_hz"][l])
        n = jnp.tanh(xn @ params["w_in"][l] + params["b_in"][l]
                     + r * (h @ params["w_hn"][l] + params["b_hn"][l]))
        h = (1.0 - z) * n + z * h
    xd = h @ params["w_dense"] + params["b_dense"]
    pooled = jax.ops.segment_max(xd, batch, num_segments=num_graphs)
    return jax.nn.sigmoid(pooled @ params["w_clf"] + params["b_clf"])[:, 0]


if __name__ == "__main__":
    hidden_size = 32
    layer_num = 2
    num_nodes = 8
    num_graphs = 2

    key = jax.random.PRNGKey(0)
    k_param, k_x = jax.random.split(key)

    params = init_params(k_param, hidden_size, layer_num)
    x = jax.random.normal(k_x, (num_nodes, hidden_size), jnp.float32)
    # Two small graphs: nodes 0-3 -> graph 0, nodes 4-7 -> graph 1
    edge_index = jnp.array(
        [[0, 1, 2, 3, 1, 2, 4, 5, 6, 7, 5, 6],
         [1, 2, 3, 0, 0, 1, 5, 6, 7, 4, 4, 5]], dtype=jnp.int32)
    batch = jnp.array([0, 0, 0, 0, 1, 1, 1, 1], dtype=jnp.int32)

    out = espi_forward(params, x, edge_index, batch, num_graphs)
    out = jax.block_until_ready(out)

    ref = espi_reference(params, x, edge_index, batch, num_graphs)
    assert out.shape == (num_graphs,)
    # bf16 MXU inputs (f32 accumulate) -> tolerance relaxed vs. the f32 reference.
    assert jnp.allclose(out, ref, rtol=2e-2, atol=2e-2), (out, ref)

    print("KERNEL_OK")
</pallas_src>

<mosaic_0001>
module attributes {stable_mosaic.version = 11 : i64} {
  func.func @espi_kernel(%arg0: i32, %arg1: memref<8x32xf32, #tpu.memory_space<vmem>>, %arg2: memref<8x8xbf16, #tpu.memory_space<vmem>>, %arg3: memref<1x32x128xbf16, #tpu.memory_space<vmem>>, %arg4: memref<1x32x128xbf16, #tpu.memory_space<vmem>>, %arg5: memref<1x1x128xf32, #tpu.memory_space<vmem>>, %arg6: memref<1x1x128xf32, #tpu.memory_space<vmem>>, %arg7: memref<32x32xbf16, #tpu.memory_space<vmem>>, %arg8: memref<1x32xf32, #tpu.memory_space<vmem>>, %arg9: memref<1x32xf32, #tpu.memory_space<vmem>>, %arg10: memref<1x1xf32, #tpu.memory_space<vmem>>, %arg11: memref<8x8xf32, #tpu.memory_space<vmem>>, %arg12: memref<8x128xf32, #tpu.memory_space<vmem>>, %arg13: memref<8x32xf32, #tpu.memory_space<vmem>>) attributes {dimension_semantics = [#tpu.dimension_semantics<arbitrary>], iteration_bounds = array<i64: 2>, scalar_prefetch = 0 : i64, scratch_operands = 1 : i64, tpu.core_type = #tpu.core_type<tc>, window_params = [{pipeline_mode = #tpu.pipeline_mode<synchronous>, transform_indices = @transform_0, window_bounds = array<i64: 8, 32>}, {pipeline_mode = #tpu.pipeline_mode<synchronous>, transform_indices = @transform_1, window_bounds = array<i64: 8, 8>}, {transform_indices = @transform_2, window_bounds = array<i64: 1, 32, 128>}, {transform_indices = @transform_3, window_bounds = array<i64: 1, 32, 128>}, {transform_indices = @transform_4, window_bounds = array<i64: 1, 1, 128>}, {transform_indices = @transform_5, window_bounds = array<i64: 1, 1, 128>}, {pipeline_mode = #tpu.pipeline_mode<synchronous>, transform_indices = @transform_6, window_bounds = array<i64: 32, 32>}, {pipeline_mode = #tpu.pipeline_mode<synchronous>, transform_indices = @transform_7, window_bounds = array<i64: 1, 32>}, {pipeline_mode = #tpu.pipeline_mode<synchronous>, transform_indices = @transform_8, window_bounds = array<i64: 1, 32>}, {pipeline_mode = #tpu.pipeline_mode<synchronous>, transform_indices = @transform_9, window_bounds = array<i64: 1, 1>}, {pipeline_mode = #tpu.pipeline_mode<synchronous>, transform_indices = @transform_10, window_bounds = array<i64: 8, 8>}, {pipeline_mode = #tpu.pipeline_mode<synchronous>, transform_indices = @transform_11, window_bounds = array<i64: 8, 128>}]} {
    %c0_i32 = arith.constant 0 : i32
    %0 = arith.cmpi eq, %arg0, %c0_i32 : i32
    %1 = arith.extui %0 : i1 to i32
    %c0_i32_0 = arith.constant 0 : i32
    %2 = arith.cmpi ne, %1, %c0_i32_0 : i32
    scf.if %2 {
      %c0_24 = arith.constant 0 : index
      %c0_25 = arith.constant 0 : index
      %52 = vector.load %arg1[%c0_24, %c0_25] : memref<8x32xf32, #tpu.memory_space<vmem>>, vector<8x32xf32>
      %c0_26 = arith.constant 0 : index
      %c0_27 = arith.constant 0 : index
      %53 = vector.load %arg13[%c0_26, %c0_27] : memref<8x32xf32, #tpu.memory_space<vmem>>, vector<8x32xf32>
      tpu.vector_store %arg13[%c0_26, %c0_27], %52 {strides = array<i32>} : memref<8x32xf32, #tpu.memory_space<vmem>>, vector<8x32xf32>,
    } else {
    }
    %c0 = arith.constant 0 : index
    %c0_1 = arith.constant 0 : index
    %3 = vector.load %arg13[%c0, %c0_1] : memref<8x32xf32, #tpu.memory_space<vmem>>, vector<8x32xf32>
    %4 = arith.truncf %3 : vector<8x32xf32> to vector<8x32xbf16>
    %c0_2 = arith.constant 0 : index
    %c0_3 = arith.constant 0 : index
    %5 = vector.load %arg2[%c0_2, %c0_3] : memref<8x8xbf16, #tpu.memory_space<vmem>>, vector<8x8xbf16>
    %cst = arith.constant dense<0.000000e+00> : vector<8x32xf32>
    %6 = tpu.matmul %5, %4, %cst {dimension_numbers = #tpu.dot_dimension_numbers<[1], [0], [0], [1], [0, 0, 1, 1], [], []>} : vector<8x8xbf16>, vector<8x32xbf16>, vector<8x32xf32> -> vector<8x32xf32>
    %7 = arith.truncf %6 : vector<8x32xf32> to vector<8x32xbf16>
    %c0_4 = arith.constant 0 : index
    %c0_5 = arith.constant 0 : index
    %c0_6 = arith.constant 0 : index
    %8 = vector.load %arg3[%c0_4, %c0_5, %c0_6] : memref<1x32x128xbf16, #tpu.memory_space<vmem>>, vector<1x32x128xbf16>
    %9 = vector.shape_cast %8 : vector<1x32x128xbf16> to vector<32x128xbf16>
    %cst_7 = arith.constant dense<0.000000e+00> : vector<8x128xf32>
    %10 = tpu.matmul %7, %9, %cst_7 {dimension_numbers = #tpu.dot_dimension_numbers<[1], [0], [0], [1], [0, 0, 1, 1], [], []>} : vector<8x32xbf16>, vector<32x128xbf16>, vector<8x128xf32> -> vector<8x128xf32>
    %c0_8 = arith.constant 0 : index
    %c0_9 = arith.constant 0 : index
    %c0_10 = arith.constant 0 : index
    %11 = vector.load %arg5[%c0_8, %c0_9, %c0_10] : memref<1x1x128xf32, #tpu.memory_space<vmem>>, vector<1x1x128xf32>
    %12 = vector.shape_cast %11 : vector<1x1x128xf32> to vector<1x128xf32>
    %13 = vector.broadcast %12 : vector<1x128xf32> to vector<8x128xf32>
    %14 = arith.addf %10, %13 : vector<8x128xf32>
    %c0_11 = arith.constant 0 : index
    %c0_12 = arith.constant 0 : index
    %c0_13 = arith.constant 0 : index
    %15 = vector.load %arg4[%c0_11, %c0_12, %c0_13] : memref<1x32x128xbf16, #tpu.memory_space<vmem>>, vector<1x32x128xbf16>
    %16 = vector.shape_cast %15 : vector<1x32x128xbf16> to vector<32x128xbf16>
    %cst_14 = arith.constant dense<0.000000e+00> : vector<8x128xf32>
    %17 = tpu.matmul %4, %16, %cst_14 {dimension_numbers = #tpu.dot_dimension_numbers<[1], [0], [0], [1], [0, 0, 1, 1], [], []>} : vector<8x32xbf16>, vector<32x128xbf16>, vector<8x128xf32> -> vector<8x128xf32>
    %c0_15 = arith.constant 0 : index
    %c0_16 = arith.constant 0 : index
    %c0_17 = arith.constant 0 : index
    %18 = vector.load %arg6[%c0_15, %c0_16, %c0_17] : memref<1x1x128xf32, #tpu.memory_space<vmem>>, vector<1x1x128xf32>
    %19 = vector.shape_cast %18 : vector<1x1x128xf32> to vector<1x128xf32>
    %20 = vector.broadcast %19 : vector<1x128xf32> to vector<8x128xf32>
    %21 = arith.addf %17, %20 : vector<8x128xf32>
    %22 = vector.extract_strided_slice %14 {offsets = [0, 0], sizes = [8, 32], strides = [1, 1]} : vector<8x128xf32> to vector<8x32xf32>
    %23 = vector.extract_strided_slice %21 {offsets = [0, 0], sizes = [8, 32], strides = [1, 1]} : vector<8x128xf32> to vector<8x32xf32>
    %24 = arith.addf %22, %23 : vector<8x32xf32>
    %25 = arith.negf %24 : vector<8x32xf32>
    %26 = math.exp %25 : vector<8x32xf32>
    %cst_18 = arith.constant 1.000000e+00 : f32
    %27 = vector.broadcast %cst_18 : f32 to vector<8x32xf32>
    %28 = arith.addf %27, %26 : vector<8x32xf32>
    %29 = arith.divf %27, %28 : vector<8x32xf32>
    %30 = vector.extract_strided_slice %14 {offsets = [0, 32], sizes = [8, 32], strides = [1, 1]} : vector<8x128xf32> to vector<8x32xf32>
    %31 = vector.extract_strided_slice %21 {offsets = [0, 32], sizes = [8, 32], strides = [1, 1]} : vector<8x128xf32> to vector<8x32xf32>
    %32 = arith.addf %30, %31 : vector<8x32xf32>
    %33 = arith.negf %32 : vector<8x32xf32>
    %34 = math.exp %33 : vector<8x32xf32>
    %cst_19 = arith.constant 1.000000e+00 : f32
    %35 = vector.broadcast %cst_19 : f32 to vector<8x32xf32>
    %36 = arith.addf %35, %34 : vector<8x32xf32>
    %37 = arith.divf %35, %36 : vector<8x32xf32>
    %38 = vector.extract_strided_slice %14 {offsets = [0, 64], sizes = [8, 32], strides = [1, 1]} : vector<8x128xf32> to vector<8x32xf32>
    %39 = vector.extract_strided_slice %21 {offsets = [0, 64], sizes = [8, 32], strides = [1, 1]} : vector<8x128xf32> to vector<8x32xf32>
    %40 = arith.mulf %29, %39 : vector<8x32xf32>
    %41 = arith.addf %38, %40 : vector<8x32xf32>
    %42 = math.tanh %41 : vector<8x32xf32>
    %cst_20 = arith.constant 1.000000e+00 : f32
    %43 = vector.broadcast %cst_20 : f32 to vector<8x32xf32>
    %44 = arith.subf %43, %37 : vector<8x32xf32>
    %45 = arith.mulf %44, %42 : vector<8x32xf32>
    %46 = arith.mulf %37, %3 : vector<8x32xf32>
    %47 = arith.addf %45, %46 : vector<8x32xf32>
    %c0_21 = arith.constant 0 : index
    %c0_22 = arith.constant 0 : index
    %48 = vector.load %arg13[%c0_21, %c0_22] : memref<8x32xf32, #tpu.memory_space<vmem>>, vector<8x32xf32>
    tpu.vector_store %arg13[%c0_21, %c0_22], %47 {strides = array<i32>} : memref<8x32xf32, #tpu.memory_space<vmem>>, vector<8x32xf32>,
    %c1_i32 = arith.constant 1 : i32
    %49 = arith.cmpi eq, %arg0, %c1_i32 : i32
    %50 = arith.extui %49 : i1 to i32
    %c0_i32_23 = arith.constant 0 : i32
    %51 = arith.cmpi ne, %50, %c0_i32_23 : i32
    scf.if %51 {
      %52 = arith.truncf %47 : vector<8x32xf32> to vector<8x32xbf16>
      %c0_24 = arith.constant 0 : index
      %c0_25 = arith.constant 0 : index
      %53 = vector.load %arg7[%c0_24, %c0_25] : memref<32x32xbf16, #tpu.memory_space<vmem>>, vector<32x32xbf16>
      %cst_26 = arith.constant dense<0.000000e+00> : vector<8x32xf32>
      %54 = tpu.matmul %52, %53, %cst_26 {dimension_numbers = #tpu.dot_dimension_numbers<[1], [0], [0], [1], [0, 0, 1, 1], [], []>} : vector<8x32xbf16>, vector<32x32xbf16>, vector<8x32xf32> -> vector<8x32xf32>
      %c0_27 = arith.constant 0 : index
      %c0_28 = arith.constant 0 : index
      %55 = vector.load %arg8[%c0_27, %c0_28] : memref<1x32xf32, #tpu.memory_space<vmem>>, vector<1x32xf32>
      %56 = vector.broadcast %55 : vector<1x32xf32> to vector<8x32xf32>
      %57 = arith.addf %54, %56 : vector<8x32xf32>
      %c0_29 = arith.constant 0 : index
      %c0_30 = arith.constant 0 : index
      %58 = vector.load %arg11[%c0_29, %c0_30] : memref<8x8xf32, #tpu.memory_space<vmem>>, vector<8x8xf32>
      %cst_31 = arith.constant -1.000000e+30 : f32
      %59 = vector.broadcast %cst_31 : f32 to vector<8x32xf32>
      %60 = vector.shape_cast %57 : vector<8x32xf32> to vector<1x8x32xf32>
      %61 = vector.shape_cast %58 : vector<8x8xf32> to vector<8x8x1xf32>
      %62 = vector.broadcast %60 : vector<1x8x32xf32> to vector<8x8x32xf32>
      %63 = vector.broadcast %61 : vector<8x8x1xf32> to vector<8x8x32xf32>
      %64 = arith.addf %62, %63 : vector<8x8x32xf32>
      %cst_32 = arith.constant dense<0xFF800000> : vector<8x32xf32>
      %65 = vector.multi_reduction <maximumf>, %64, %cst_32 [1] : vector<8x8x32xf32> to vector<8x32xf32>
      %66 = arith.maximumf %59, %65 : vector<8x32xf32>
      %c0_33 = arith.constant 0 : index
      %c0_34 = arith.constant 0 : index
      %67 = vector.load %arg9[%c0_33, %c0_34] : memref<1x32xf32, #tpu.memory_space<vmem>>, vector<1x32xf32>
      %68 = vector.broadcast %67 : vector<1x32xf32> to vector<8x32xf32>
      %69 = arith.mulf %66, %68 : vector<8x32xf32>
      %cst_35 = arith.constant dense<0.000000e+00> : vector<8xf32>
      %70 = vector.multi_reduction <add>, %69, %cst_35 [1] : vector<8x32xf32> to vector<8xf32>
      %71 = vector.shape_cast %70 : vector<8xf32> to vector<8x1xf32>
      %c0_36 = arith.constant 0 : index
      %c0_37 = arith.constant 0 : index
      %72 = vector.load %arg10[%c0_36, %c0_37] : memref<1x1xf32, #tpu.memory_space<vmem>>, vector<1x1xf32>
      %73 = vector.broadcast %72 : vector<1x1xf32> to vector<8x1xf32>
      %74 = arith.addf %71, %73 : vector<8x1xf32>
      %75 = arith.negf %74 : vector<8x1xf32>
      %76 = math.exp %75 : vector<8x1xf32>
      %cst_38 = arith.constant 1.000000e+00 : f32
      %77 = vector.broadcast %cst_38 : f32 to vector<8x1xf32>
      %78 = arith.addf %77, %76 : vector<8x1xf32>
      %79 = arith.divf %77, %78 : vector<8x1xf32>
      %80 = vector.shape_cast %79 : vector<8x1xf32> to vector<8x1xf32>
      %81 = vector.broadcast %80 : vector<8x1xf32> to vector<8x128xf32>
      %c0_39 = arith.constant 0 : index
      %c0_40 = arith.constant 0 : index
      %82 = vector.load %arg12[%c0_39, %c0_40] : memref<8x128xf32, #tpu.memory_space<vmem>>, vector<8x128xf32>
      tpu.vector_store %arg12[%c0_39, %c0_40], %81 {strides = array<i32>} : memref<8x128xf32, #tpu.memory_space<vmem>>, vector<8x128xf32>,
    } else {
    }
    return
  }
  func.func @transform_0(%arg0: i32) -> (i32, i32) {
    %c0_i32 = arith.constant 0 : i32
    %c0_i32_0 = arith.constant 0 : i32
    %c0_i32_1 = arith.constant 0 : i32
    return %c0_i32, %c0_i32_0 : i32, i32
  }
  func.func @transform_1(%arg0: i32) -> (i32, i32) {
    %c0_i32 = arith.constant 0 : i32
    %c0_i32_0 = arith.constant 0 : i32
    %c0_i32_1 = arith.constant 0 : i32
    return %c0_i32, %c0_i32_0 : i32, i32
  }
  func.func @transform_2(%arg0: i32) -> (i32, i32, i32) {
    %c0_i32 = arith.constant 0 : i32
    %c0_i32_0 = arith.constant 0 : i32
    %c0_i32_1 = arith.constant 0 : i32
    return %arg0, %c0_i32, %c0_i32_0 : i32, i32, i32
  }
  func.func @transform_3(%arg0: i32) -> (i32, i32, i32) {
    %c0_i32 = arith.constant 0 : i32
    %c0_i32_0 = arith.constant 0 : i32
    %c0_i32_1 = arith.constant 0 : i32
    return %arg0, %c0_i32, %c0_i32_0 : i32, i32, i32
  }
  func.func @transform_4(%arg0: i32) -> (i32, i32, i32) {
    %c0_i32 = arith.constant 0 : i32
    %c0_i32_0 = arith.constant 0 : i32
    %c0_i32_1 = arith.constant 0 : i32
    return %arg0, %c0_i32, %c0_i32_0 : i32, i32, i32
  }
  func.func @transform_5(%arg0: i32) -> (i32, i32, i32) {
    %c0_i32 = arith.constant 0 : i32
    %c0_i32_0 = arith.constant 0 : i32
    %c0_i32_1 = arith.constant 0 : i32
    return %arg0, %c0_i32, %c0_i32_0 : i32, i32, i32
  }
  func.func @transform_6(%arg0: i32) -> (i32, i32) {
    %c0_i32 = arith.constant 0 : i32
    %c0_i32_0 = arith.constant 0 : i32
    %c0_i32_1 = arith.constant 0 : i32
    return %c0_i32, %c0_i32_0 : i32, i32
  }
  func.func @transform_7(%arg0: i32) -> (i32, i32) {
    %c0_i32 = arith.constant 0 : i32
    %c0_i32_0 = arith.constant 0 : i32
    %c0_i32_1 = arith.constant 0 : i32
    return %c0_i32, %c0_i32_0 : i32, i32
  }
  func.func @transform_8(%arg0: i32) -> (i32, i32) {
    %c0_i32 = arith.constant 0 : i32
    %c0_i32_0 = arith.constant 0 : i32
    %c0_i32_1 = arith.constant 0 : i32
    return %c0_i32, %c0_i32_0 : i32, i32
  }
  func.func @transform_9(%arg0: i32) -> (i32, i32) {
    %c0_i32 = arith.constant 0 : i32
    %c0_i32_0 = arith.constant 0 : i32
    %c0_i32_1 = arith.constant 0 : i32
    return %c0_i32, %c0_i32_0 : i32, i32
  }
  func.func @transform_10(%arg0: i32) -> (i32, i32) {
    %c0_i32 = arith.constant 0 : i32
    %c0_i32_0 = arith.constant 0 : i32
    %c0_i32_1 = arith.constant 0 : i32
    return %c0_i32, %c0_i32_0 : i32, i32
  }
  func.func @transform_11(%arg0: i32) -> (i32, i32) {
    %c0_i32 = arith.constant 0 : i32
    %c0_i32_0 = arith.constant 0 : i32
    %c0_i32_1 = arith.constant 0 : i32
    return %c0_i32, %c0_i32_0 : i32, i32
  }
}

</mosaic_0001>

<bundles_post_ra>
// kernel: tpu_custom_call.1
= control target key start
LH: loop header
LB: loop body
LE: loop exit
PB: predicated region body
PF: predicated region fallthrough
CT: control target
= control target key end

     0   :  { %s1953_s0 = inlined_call_operand.hbm [shape: f32[8,32], index: 0, kind: input, shape index: {}]   ;;  %s1954_s1 = inlined_call_operand.hbm [shape: bf16[8,8], index: 1, kind: input, shape index: {}]   ;;  %s1955_s2 = inlined_call_operand.hbm [shape: bf16[2,32,128], index: 2, kind: input, shape index: {}]   ;;  %s1956_s3 = inlined_call_operand.hbm [shape: bf16[2,32,128], index: 3, kind: input, shape index: {}]   ;;  %s1957_s4 = inlined_call_operand.vmem [shape: f32[2,1,128], index: 4, kind: input, shape index: {}]   ;;  %s1958_s5 = inlined_call_operand.hbm [shape: f32[2,1,128], index: 5, kind: input, shape index: {}]   ;;  %s1959_s6 = inlined_call_operand.hbm [shape: bf16[32,32], index: 6, kind: input, shape index: {}]   ;;  %s1960_s7 = inlined_call_operand.hbm [shape: f32[1,32], index: 7, kind: input, shape index: {}]   ;;  %s1961_s8 = inlined_call_operand.hbm [shape: f32[1,32], index: 8, kind: input, shape index: {}]   ;;  %s1962_s9 = inlined_call_operand.<no memory space> [shape: f32[1,1], index: 9, kind: input, shape index: {}]   ;;  %s1963_s10 = inlined_call_operand.vmem [shape: f32[8,8], index: 10, kind: input, shape index: {}]   ;;  %s1964_s11 = inlined_call_operand.hbm [shape: f32[8,128], index: 11, kind: output, shape index: {}]  }
   0x1   :  { %1971 = sst [smem:[#allocation25_spill]] %s1953_s0  ;;  %v16_v0 = vstv %s1962_s9 }
   0x2   :  { %1972 = sst [smem:[#allocation26_spill]] %s1954_s1  ;;  %17 = vst [vmem:[#allocation3] sm:$0x1] %v16_v0 }
   0x3   :  { %1973 = sst [smem:[#allocation27_spill]] %s1955_s2 }
   0x4   :  { %1974 = sst [smem:[#allocation28_spill]] %s1963_s10 }
   0x5   :  { %1975 = sst [smem:[#allocation29_spill]] %s1964_s11 }
   0x6   :  { %18 = vsyncpa [#allocation5], 0 }
   0x7   :  { %19 = vsyncpa [#allocation8], 0 }
   0x8   :  { %20 = vsyncpa [#allocation14], 0 }
   0x9   :  { %21 = vsyncpa [#allocation6], 0  ;;  %s1706_s19 = smov 0   ;;  %s1708_s20 = smov 0  }
   0xa   :  { %s1710_s21 = smov 0   ;;  %s1712_s22 = smov 0  }
   0xb LB: > { %s1725_s9 = sadd.s32 4294967295, %s1628_s22   ;;  %p89_p0 = scmp.ne.s32.totalorder %s1620_s20, %s1616_s19  ;;  %s1628_s22 = sphi %s1712_s22, %s1990_s22   ;;  %s1624_s21 = sphi %s1710_s21, %s1994_s21   ;;  %s1620_s20 = sphi %s1708_s20, %s1993_s20   ;;  %s1616_s19 = sphi %s1706_s19, %s1992_s19  }
   0xc   : > { %p90_p1 = scmp.eq.s32.totalorder %s1725_s9, 0  ;;  %p1107_p2 = scmp.ge.s32.totalorder %s1628_s22, 1 }
   0xd   : > { %p304_p3 = scmp.lt.s32.totalorder %s1628_s22, 3  ;;  %p1108_p4 = scmp.ne.s32.totalorder %s1725_s9, 0 }
   0xe   : > { %p1734_p5 = por %p90_p1, %p89_p0  ;;  %s1977_s0 = sld [smem:[#allocation25_spill]] }
   0xf   : > { %p1741_p6 = pnand %p1107_p2, %p304_p3  ;;  %s1630_s28 = smov [#allocation4]  }
  0x10   : > { %s318_s29 = sshll.u32 %s1630_s28, 4  ;;  %s1754_s12 = sadd.s32 1, %s1628_s22   ;;  %s319_s29 = int_to_ptr.vmem [resolvable:$true] %s318_s29 }
  0x11   : > { %p1202_p7 = pneg %p1741_p6  ;;  %1980 = sst [smem:[#allocation23_spill]] %s1754_s12 }
  0x12   : > { %s76_s13 = sadd.s32 1, %s1624_s21  ;;  %s73_s14 = ssub.s32 %s1628_s22, %s1754_s12 }
  0x13   : > { %p1749_p8 = pnand %p1202_p7, %p90_p1  ;;  %p74_p9 = scmp.eq.s32.totalorder %s73_s14, 0 }
  0x14   : > { %s316_s26 = sshll.u32 %s1977_s0, 4  ;;  %p83_p10 = scmp.ne.s32.totalorder %s1624_s21, %s1620_s20  ;;  %s317_s26 = int_to_ptr.hbm [resolvable:$true] %s316_s26 }
  0x15   : > { %1205 = dma.hbm_to_vmem [thread:$0]  (!%p1749_p8), %s317_s26, 128, %s319_s29, [#allocation5]  }
  0x16   : > { %p84_p11 = scmp.eq.s32.totalorder %s1628_s22, 0  ;;  %p1233_p13 = scmp.lt.s32.totalorder %s1628_s22, 2 }
  0x17   : > { %s1765_s15 = scalar_select %p74_p9, %s1624_s21, %s76_s13  }
  0x18   : > { %p85_p12 = por %p84_p11, %p83_p10  ;;  %s385_s16 = sand.u32 1, %s1628_s22  }
  0x19   : > { %1981 = sst [smem:[#allocation24_spill]] %s1765_s15  ;;  %s1965_s17 = sand.u32 1, %s1624_s21  }
  0x1a   : > { %s1772_s18 = sshll.u32 %s1965_s17, 4  ;;  %s1966_s19 = sshll.u32 %s1628_s22, 4 }
  0x1b   : > { %s1982_s2 = sld [smem:[#allocation27_spill]]  ;;  %s389_s29 = scalar_lea.vmem [#allocation9], %s1772_s18 }
  0x1c   : > { %s1781_s14 = sshll.u32 %s389_s29, 4  ;;  %p1784_p0 = pnand %p1233_p13, %p85_p12  ;;  %s398_s14 = int_to_ptr.vmem [resolvable:$true] %s1781_s14 }
  0x1d   : > { %s1984_s1 = sld [smem:[#allocation26_spill]]  ;;  %s1631_s24 = smov [#allocation7]  }
  0x1e   : > { %s330_s25 = sshll.u32 %s1631_s24, 4  ;;  %p1340_p3 = pneg %p1784_p0  ;;  %s331_s25 = int_to_ptr.vmem [resolvable:$true] %s330_s25 }
  0x21   : > { %s394_s28 = scalar_lea.hbm %s1982_s2, %s1966_s19  ;;  %s1343_s17 = scalar_lea.hbm %s1982_s2, 32 }
  0x22   : > { %s395_s26 = sshll.u32 %s394_s28, 4  ;;  %s1791_s28 = scalar_lea.sflag [#allocation5], %s385_s16  ;;  %s396_s26 = int_to_ptr.hbm [resolvable:$true] %s395_s26 }
  0x23   : > { %s328_s15 = sshll.u32 %s1984_s1, 4  ;;  %s1336_s29 = sshra.s32 %s396_s26, 4  ;;  %s329_s15 = int_to_ptr.hbm [resolvable:$true] %s328_s15  ;;  %s1337_s29 = int_to_ptr.hbm [resolvable:$true] %s1336_s29 }
  0x24   : > { %s1338_s19 = scalar_lea.hbm %s1337_s29, 16  ;;  %p1344_p10 = scmp.lt.s32.totalorder %s1337_s29, %s1982_s2 }
  0x25   : > { %p1339_p2 = scmp.ne.s32.totalorder %s1337_s29, %s1338_s19  ;;  %p1345_p11 = scmp.lt.s32.totalorder %s1343_s17, %s1338_s19 }
  0x27   : > { %p1341_p7 = pnand %p1340_p3, %p1339_p2  ;;  %p1346_p12 = por %p1345_p11, %p1344_p10 }
  0x29   : > { %p1342_p9 = pneg %p1341_p7 }
  0x2b   : > { %p1347_p13 = pnand %p1346_p12, %p1342_p9 }
  0x2d   : > { %1350 = shalt.err (!%p1347_p13)
}
  0x2e   : > { %s1969_s16 = smov 64   ;;  %s1633_s24 = smov 4  }
  0x2f   : > { %1221 = dma.hbm_to_vmem [thread:$0]  (!%p1784_p0), %s396_s26, 256, %s398_s14, %s1791_s28, %s1969_s16, %s1969_s16, %s1633_s24  }
  0x30   : > { %s354_s12 = sshll.u32 %s1960_s7, 4  ;;  %s1634_s19 = smov [#allocation13]   ;;  %s355_s12 = int_to_ptr.hbm [resolvable:$true] %s354_s12 }
  0x31   : > { %1208 = dma.hbm_to_vmem [thread:$0]  (!%p1749_p8), %s329_s15, 64, %s331_s25, [#allocation8]  }
  0x32   : > { %s356_s29 = sshll.u32 %s1634_s19, 4  ;;  %s1985_s0 = sshll.u32 %s1628_s22, 4  ;;  %s357_s29 = int_to_ptr.vmem [resolvable:$true] %s356_s29 }
  0x33   : > { %s416_s10 = scalar_lea.hbm %s1956_s3, %s1985_s0  ;;  %s411_s14 = scalar_lea.vmem [#allocation10], %s1772_s18 }
  0x34   : > { %1214 = dma.hbm_to_vmem [thread:$0]  (!%p1749_p8), %s355_s12, 16, %s357_s29, [#allocation14]  }
  0x35   : > { %s417_s26 = sshll.u32 %s416_s10, 4  ;;  %s419_s16 = sshll.u32 %s411_s14, 4  ;;  %s418_s26 = int_to_ptr.hbm [resolvable:$true] %s417_s26  ;;  %s420_s16 = int_to_ptr.vmem [resolvable:$true] %s419_s16 }
  0x36   : > { %s1426_s1 = sshra.s32 %s418_s26, 4  ;;  %s1433_s2 = scalar_lea.hbm %s1956_s3, 32  ;;  %s1427_s1 = int_to_ptr.hbm [resolvable:$true] %s1426_s1 }
  0x37   : > { %s1428_s15 = scalar_lea.hbm %s1427_s1, 16  ;;  %p1434_p10 = scmp.lt.s32.totalorder %s1427_s1, %s1956_s3 }
  0x38   : > { %p1429_p2 = scmp.ne.s32.totalorder %s1427_s1, %s1428_s15  ;;  %p1435_p11 = scmp.lt.s32.totalorder %s1433_s2, %s1428_s15 }
  0x3a   : > { %p1431_p7 = pnand %p1429_p2, %p1340_p3  ;;  %p1436_p12 = por %p1435_p11, %p1434_p10 }
  0x3c   : > { %p1432_p9 = pneg %p1431_p7 }
  0x3e   : > { %p1437_p13 = pnand %p1436_p12, %p1432_p9 }
  0x40   : > { %1440 = shalt.err (!%p1437_p13)
}
  0x41   : > { %s1986_s10 = smov 64   ;;  %s339_s29 = sshll.u32 %s1959_s6, 4  ;;  %s340_s29 = int_to_ptr.hbm [resolvable:$true] %s339_s29 }
  0x42   : > { %1224 = dma.hbm_to_vmem [thread:$0]  (!%p1784_p0), %s418_s26, 256, %s420_s16, %s1791_s28, %s1986_s10, %s1986_s10, %s1633_s24  }
  0x43   : > { %s1635_s17 = smov [#allocation12]   ;;  %s366_s25 = sshll.u32 %s1961_s8, 4  ;;  %s367_s25 = int_to_ptr.hbm [resolvable:$true] %s366_s25 }
  0x44   : > { %s341_s14 = sshll.u32 %s1635_s17, 4  ;;  %s1636_s16 = smov [#allocation15]   ;;  %s342_s14 = int_to_ptr.vmem [resolvable:$true] %s341_s14 }
  0x45   : > { %1211 = dma.hbm_to_vmem [thread:$0]  (!%p1749_p8), %s340_s29, 256, %s342_s14, [#allocation8], %s1986_s10, %s1986_s10, %s1633_s24  }
  0x46   : > { %s368_s26 = sshll.u32 %s1636_s16, 4  ;;  %s441_s19 = scalar_lea.hbm %s1958_s5, %s1628_s22  ;;  %s369_s26 = int_to_ptr.vmem [resolvable:$true] %s368_s26 }
  0x47   : > { %1217 = dma.hbm_to_vmem [thread:$0]  (!%p1749_p8), %s367_s25, 16, %s369_s26, [#allocation14]  }
  0x48   : > { %s443_s0 = sshll.u32 %s441_s19, 4  ;;  %s1987_s18 = sand.u32 1, %s1624_s21   ;;  %s444_s0 = int_to_ptr.hbm [resolvable:$true] %s443_s0 }
  0x49   : > { %s438_s12 = scalar_lea.vmem [#allocation11], %s1987_s18  ;;  %s1516_s1 = sshra.s32 %s444_s0, 4  ;;  %s1517_s1 = int_to_ptr.hbm [resolvable:$true] %s1516_s1 }
  0x4a   : > { %s445_s17 = sshll.u32 %s438_s12, 4  ;;  %s1518_s24 = scalar_lea.hbm %s1517_s1, 1  ;;  %s446_s17 = int_to_ptr.vmem [resolvable:$true] %s445_s17 }
  0x4b   : > { %p1519_p2 = scmp.ne.s32.totalorder %s1517_s1, %s1518_s24  ;;  %s1523_s22 = scalar_lea.hbm %s1958_s5, 2 }
  0x4c   : > { %p1524_p8 = scmp.lt.s32.totalorder %s1517_s1, %s1958_s5  ;;  %p1525_p10 = scmp.lt.s32.totalorder %s1523_s22, %s1518_s24 }
  0x4d   : > { %p1521_p7 = pnand %p1519_p2, %p1340_p3 }
  0x4e   : > { %p1526_p11 = por %p1525_p10, %p1524_p8 }
  0x4f   : > { %p1522_p9 = pneg %p1521_p7 }
  0x51   : > { %p1527_p12 = pnand %p1526_p11, %p1522_p9 }
  0x53   : > { %1530 = shalt.err (!%p1527_p12)
}
  0x54   : > { %1227 = dma.hbm_to_vmem [thread:$0]  (!%p1784_p0), %s444_s0, 16, %s446_s17, %s1791_s28  }
  0x55   : > { %454 = sbr.rel (%p1741_p6) target bundleno = 1276 (0x4fc), region = 64 }
  0x5a   : > { %1591 = dma.done.wait (%p90_p1), [#allocation5], 128  }
  0x5b   : > { %1593 = vsyncadd (%p90_p1), [#allocation5], 4294967168 }
  0x5c   : > { %1595 = dma.done.wait (%p90_p1), [#allocation8], 64  }
  0x5d   : > { %1597 = vsyncadd (%p90_p1), [#allocation8], 4294967232  ;;  %s466_s13 = sand.u32 1, %s1725_s9   ;;  %s468_s28 = sand.u32 1, %s1620_s20  }
  0x5e   : > { %s1881_s15 = sshll.u32 %s468_s28, 4  ;;  %s467_s27 = scalar_lea.sflag [#allocation5], %s466_s13 }
  0x5f   : > { %s470_s25 = scalar_lea.vmem [#allocation9], %s1881_s15 }
  0x60   : > { %1599 = dma.done.wait (%p1734_p5), %s467_s27, 528  }
  0x61   : > { %1601 = vsyncadd (%p1734_p5), %s467_s27, 4294966768  ;;  %s480_s16 = scalar_lea.vmem [#allocation10], %s1881_s15  ;;  %s1889_s26 = scalar_lea.vmem [#allocation11], %s468_s28 }
  0x62   : > { %1603 = dma.done.wait (%p90_p1), [#allocation8], 256  }
  0x63   : > { %1605 = vsyncadd (%p90_p1), [#allocation8], 4294967040 }
  0x64   : > { %1607 = dma.done.wait (%p90_p1), [#allocation14], 32  }
  0x65   : > { %1609 = vsyncadd (%p90_p1), [#allocation14], 4294967264  ;;  %p551_p6 = scmp.lt.s32.totalorder %s1725_s9, 1  ;;  %558 = sbr.rel (%p1108_p4) target bundleno = 108 (0x6c), region = 100 }
  0x67   : > { %s1901_s23 = scalar_select %p551_p6, %s1725_s9, 1 }
  0x69   : > { %s553_s19 = scalar_lea.vmem %s1957_s4, %s1901_s23 }
  0x6a   : > { %v559_v1 = vld [vmem:[#allocation4] sm:$0xff]  ;;  %vm560_vm0 = vcmask 261120  }
  0x6b   : > { %561 = vst.msk [vmem:[#allocation2] sm:$0xff] %vm560_vm0, %v559_v1 }
  0x6c PF: > { %vm569_vm1 = vcmask 1043456   ;;  %v1169_v3 = vld [vmem:[%s480_s16 + $0x8] sm:$0xff]  ;;  %v1168_v6 = vld [vmem:[%s480_s16] sm:$0xff]  ;;  %vm565_vm2 = vcmask 64512   ;;  %vm607_vm3 = vcmask 261120   ;;  %s1637_s0 = smov 64  }
  0x6d   : > { %v1167_v5 = vld [vmem:[%s470_s25 + $0x8] sm:$0xff]  ;;  %652 = vmatpush.bf16.msra.mxu2 %v1169_v3  ;;  %v1166_v9 = vld [vmem:[%s470_s25] sm:$0xff]  ;;  %s1638_s17 = smov 96   ;;  %s1639_s1 = smov 32  }
  0x6e   : > { %617 = vmatpush.bf16.msra.mxu1 %v1167_v5  ;;  %v564_v8 = vld [vmem:[#allocation7] sm:$0xf]  ;;  %v1286_v12 = vld [vmem:[%s1889_s26] ss:$0 sm:$0xff]  ;;  %p1149_p1 = scmp.ne.s32.totalorder %s1725_s9, 1 }
  0x6f   : > { %v1287_v17 = vld [vmem:[%s553_s19] ss:$0 sm:$0xff]  ;;  %s1640_s24 = smov (!%p1149_p1), 96   ;;  %s1988_s22 = sld [smem:[#allocation28_spill]] (!%p1149_p1) }
  0x71   : > { %653 = vmatpush.bf16.msra.mxu2 %v1168_v6 }
  0x72   : > { %v562_v2 = vld [vmem:[#allocation2] sm:$0xff]  ;;  %618 = vmatpush.bf16.msra.mxu1 %v1166_v9 }
  0x73   : > { %v563_v4 = vpack.c.bf16 %v562_v2, %v562_v2 }
  0x75   : > { %v571_v7 = vsel %vm569_vm1, %v563_v4, 0  ;;  %1147 = vmatmul.msk.bf16.vlgmr.msra.gmra.mxu2 %vm607_vm3, %v563_v4 }
  0x76   : > { %580 = vmatpush.bf16.msra.mxu0 %v571_v7 }
  0x79   : > { %1129 = vmatmul.msk.bf16.vlgmr.msra.gmra.mxu0 %vm565_vm2, %v564_v8 }
  0xf6   : > { %v582_v10 = vpop.f32.mrf.mxu0 }
  0xf7   : > { %v586_v11 = vpack.c.bf16 %v582_v10, %v582_v10 }
  0xf8   : > { %v655_v14 = vpop.f32.mrf.mxu2 }
  0xf9   : > { %1138 = vmatmul.msk.bf16.vlgmr.msra.gmra.mxu1 %vm607_vm3, %v586_v11  ;;  %v656_v15 = vadd.f32 %v1286_v12, %v655_v14 }
  0xfb   : > { %680 = vrot.lane.b32.xlu0 %v656_v15, %s1637_s0 }
  0xfe   : > { %v584_v13 = vpop.f32.mrf.mxu0 }
 0x100   : > { %v657_v16 = vpop.f32.mrf.mxu2 }
 0x16d   : > { %v681_v32 = vpop.permute.xlu0 %680 }
 0x176   : > { %v620_v18 = vpop.f32.mrf.mxu1 }
 0x177   : > { %v621_v19 = vadd.f32 %v1287_v17, %v620_v18 }
 0x179   : > { %v659_v20 = vadd.f32 %v656_v15, %v621_v19 }
 0x17b   : > { %v1148_v21 = vmul.f32 -1.442695, %v659_v20 }
 0x17d   : > { %1288 = vpow2.f32 %v1148_v21 }
 0x17e   : > { %v622_v22 = vpop.f32.mrf.mxu1 }
 0x183   : > { %v1289_v23 = vpop.eup %1288 }
 0x184   : > { %v663_v24 = vadd.f32 1.0, %v1289_v23 }
 0x186   : > { %1290 = vrcp.f32 %v663_v24  ;;  %v675_v28 = vand.u32 2147483648, %v663_v24  ;;  %v673_v30 = vand.u32 2147483647, %v663_v24  ;;  %vm669_vm5 = vweird.f32 %v663_v24 }
 0x188   : > { %v676_v33 = vor.u32 1.1754944e-38, %v675_v28  ;;  %vm674_vm7 = vcmp.eq.f32.partialorder %v673_v30, 8.507059e+37 }
 0x18c   : > { %v1291_v25 = vpop.eup %1290 }
 0x18d   : > { %v665_v26 = vmul.f32 %v1291_v25, %v663_v24  ;;  %vm670_vm4 = vweird.f32 %v1291_v25 }
 0x18e   : > { %vm671_vm6 = vmor %vm669_vm5, %vm670_vm4 }
 0x18f   : > { %v666_v27 = vsub.f32 1.0, %v665_v26 }
 0x191   : > { %v667_v29 = vmul.f32 %v1291_v25, %v666_v27 }
 0x193   : > { %v668_v31 = vadd.f32 %v1291_v25, %v667_v29 }
 0x195   : > { %v672_v34 = vsel %vm671_vm6, %v1291_v25, %v668_v31 }
 0x196   : > { %v677_v35 = vsel %vm674_vm7, %v676_v33, %v672_v34 }
 0x197   : > { %v683_v36 = vmul.f32 %v681_v32, %v677_v35  ;;  %v690_v41 = vsub.f32 1.0, %v677_v35 }
 0x199   : > { %685 = vrot.lane.b32.xlu0 %v683_v36, %s1637_s0 }
 0x20b   : > { %v686_v37 = vpop.permute.xlu0 %685 }
 0x20c   : > { %v688_v38 = vadd.f32 %v686_v37, %v621_v19 }
 0x20e   : > { %1292 = vtanh.f32 %v688_v38 }
 0x214   : > { %v1293_v39 = vpop.eup %1292 }
 0x215   : > { %692 = vrot.lane.b32.xlu1 %v1293_v39, %s1638_s17 }
 0x21d   : > { %697 = vrot.lane.b32.xlu1 %v562_v2, %s1639_s1 }
 0x287   : > { %v693_v40 = vpop.permute.xlu1 %692 }
 0x288   : > { %v695_v43 = vmul.f32 %v693_v40, %v690_v41 }
 0x28f   : > { %v698_v42 = vpop.permute.xlu1 %697 }
 0x290   : > { %v700_v44 = vmul.f32 %v698_v42, %v677_v35 }
 0x292   : > { %v701_v45 = vadd.f32 %v700_v44, %v695_v43 }
 0x294   : > { %703 = vrot.lane.b32.xlu2 %v701_v45, %s1638_s17 }
 0x2eb   : > { %710 = sbr.rel (%p1149_p1) target bundleno = 1265 (0x4f1), region = 104 }
 0x2ee   : > { %v704_v46 = vpop.permute.xlu2 %703 }
 0x2ef   : > { %706 = vst.msk [vmem:[#allocation2] sm:$0xff] %vm607_vm3, %v704_v46 }
 0x2f0   : > { %v711_v47 = vpack.c.bf16 %v701_v45, %v701_v45  ;;  %v753_v48 = vlaneseq  ;;  %v1171_v49 = vld [vmem:[#allocation12 + $0x8] sm:$0xff]  ;;  %v1170_v51 = vld [vmem:[#allocation12] sm:$0xff]  ;;  %v1299_v3 = vld [vmem:[#allocation13] ss:$0 sm:$0xff]  ;;  %vm901_vm8 = vcmask 1041409   ;;  %vm904_vm9 = vcmask 1042434  }
 0x2f1   : > { %744 = vmatpush.bf16.msra.mxu0 %v1171_v49  ;;  %v751_v52 = vld [vmem:[%s1988_s22] sm:$0xff]  ;;  %vm907_vm10 = vcmask 1043459   ;;  %vm910_vm11 = vcmask 1044484   ;;  %vm913_vm12 = vcmask 1045509   ;;  %vm916_vm13 = vcmask 1046534  }
 0x2f2   : > { %721 = vrot.lane.b32.xlu0 %v711_v47, %s1640_s24  ;;  %v754_v50 = vshrl.u32 %v753_v48, 7  ;;  %v766_v53 = vperm.slane %v751_v52, 2  ;;  %v752_v54 = vperm.slane %v751_v52, 0  ;;  %v787_v55 = vperm.slane %v751_v52, 5 }
 0x2f3   : > { %v759_v56 = vperm.slane %v751_v52, 1  ;;  %v773_v57 = vperm.slane %v751_v52, 3  ;;  %v801_v58 = vperm.slane %v751_v52, 7  ;;  %v780_v59 = vperm.slane %v751_v52, 4 }
 0x2f4   : > { %1295 = vset.pattern.permute.xlu1 %v754_v50  ;;  %1294 = vset.pattern.permute.xlu0 %v754_v50  ;;  %v794_v60 = vperm.slane %v751_v52, 6  ;;  %vm919_vm14 = vcmask 1047559  }
 0x2f5   : > { %1296 = vset.pattern.permute.xlu2 %v754_v50  ;;  %745 = vmatpush.bf16.msra.mxu0 %v1170_v51 }
 0x2fc   : > { %771 = vperm.xlu1 %1295, %v766_v53   ;;  %764 = vperm.xlu0 %1294, %v759_v56  }
 0x2fd   : > { %778 = vperm.xlu2 %1296, %v773_v57  }
 0x304   : > { %757 = vperm.xlu1 %1295, %v752_v54   ;;  %806 = vperm.xlu0 %1294, %v801_v58  }
 0x305   : > { %785 = vperm.xlu2 %1296, %v780_v59  }
 0x30c   : > { %792 = vperm.xlu1 %1295, %v787_v55  }
 0x30d   : > { %799 = vperm.xlu2 %1296, %v794_v60  }
 0x357   : > { %v779_v63 = vpop.permute.xlu2 %778 }
 0x35f   : > { %v786_v2 = vpop.permute.xlu2 %785 }
 0x364   : > { %v722_v61 = vpop.permute.xlu0 %721 }
 0x365   : > { %1158 = vmatmul.msk.bf16.vlgmr.msra.gmra.mxu0 %vm607_vm3, %v722_v61 }
 0x367   : > { %v800_v8 = vpop.permute.xlu2 %799 }
 0x36e   : > { %v772_v62 = vpop.permute.xlu1 %771  ;;  %v765_v0 = vpop.permute.xlu0 %764 }
 0x376   : > { %v758_v1 = vpop.permute.xlu1 %757  ;;  %v807_v6 = vpop.permute.xlu0 %806 }
 0x37e   : > { %v793_v7 = vpop.permute.xlu1 %792 }
 0x3e2   : > { %v747_v4 = vpop.f32.mrf.mxu0 }
 0x3e3   : > { %v748_v5 = vadd.f32 %v1299_v3, %v747_v4 }
 0x3e5   : > { %v815_v9 = vadd.f32 %v807_v6, %v748_v5  ;;  %v808_v10 = vadd.f32 %v758_v1, %v748_v5  ;;  %v809_v11 = vadd.f32 %v765_v0, %v748_v5  ;;  %v810_v12 = vadd.f32 %v772_v62, %v748_v5 }
 0x3e6   : > { %v811_v13 = vadd.f32 %v779_v63, %v748_v5  ;;  %v812_v14 = vadd.f32 %v786_v2, %v748_v5  ;;  %v813_v15 = vadd.f32 %v793_v7, %v748_v5  ;;  %v814_v16 = vadd.f32 %v800_v8, %v748_v5  ;;  %v1300_v2 = vld [vmem:[#allocation15] ss:$0 sm:$0xff] }
 0x3e7   : > { %v865_v17 = vsel %vm607_vm3, %v815_v9, -inf  ;;  %v816_v18 = vsel %vm607_vm3, %v808_v10, -inf  ;;  %v823_v19 = vsel %vm607_vm3, %v809_v11, -inf  ;;  %v830_v20 = vsel %vm607_vm3, %v810_v12, -inf }
 0x3e8   : > { %v866_v21 = vrot.slane %v865_v17, 4  ;;  %v817_v22 = vrot.slane %v816_v18, 4  ;;  %v824_v23 = vrot.slane %v823_v19, 4  ;;  %v831_v24 = vrot.slane %v830_v20, 4 }
 0x3e9   : > { %v837_v25 = vsel %vm607_vm3, %v811_v13, -inf  ;;  %v844_v26 = vsel %vm607_vm3, %v812_v14, -inf  ;;  %v851_v27 = vsel %vm607_vm3, %v813_v15, -inf  ;;  %v858_v28 = vsel %vm607_vm3, %v814_v16, -inf }
 0x3ea   : > { %v867_v29 = vmax.f32 %v865_v17, %v866_v21  ;;  %v749_v30 = vpop.f32.mrf.mxu0  ;;  %v818_v31 = vmax.f32 %v816_v18, %v817_v22  ;;  %v825_v32 = vmax.f32 %v823_v19, %v824_v23  ;;  %v832_v33 = vmax.f32 %v830_v20, %v831_v24 }
 0x3eb   : > { %v838_v34 = vrot.slane %v837_v25, 4  ;;  %v845_v35 = vrot.slane %v844_v26, 4  ;;  %v852_v36 = vrot.slane %v851_v27, 4  ;;  %v859_v37 = vrot.slane %v858_v28, 4 }
 0x3ec   : > { %v868_v38 = vrot.slane %v867_v29, 2  ;;  %v819_v39 = vrot.slane %v818_v31, 2  ;;  %v826_v40 = vrot.slane %v825_v32, 2  ;;  %v833_v41 = vrot.slane %v832_v33, 2 }
 0x3ed   : > { %v839_v42 = vmax.f32 %v837_v25, %v838_v34  ;;  %v846_v43 = vmax.f32 %v844_v26, %v845_v35  ;;  %v853_v44 = vmax.f32 %v851_v27, %v852_v36  ;;  %v860_v45 = vmax.f32 %v858_v28, %v859_v37 }
 0x3ee   : > { %v869_v46 = vmax.f32 %v867_v29, %v868_v38  ;;  %v820_v47 = vmax.f32 %v818_v31, %v819_v39  ;;  %v827_v48 = vmax.f32 %v825_v32, %v826_v40  ;;  %v834_v49 = vmax.f32 %v832_v33, %v833_v41 }
 0x3ef   : > { %v840_v50 = vrot.slane %v839_v42, 2  ;;  %v847_v51 = vrot.slane %v846_v43, 2  ;;  %v854_v52 = vrot.slane %v853_v44, 2  ;;  %v861_v53 = vrot.slane %v860_v45, 2 }
 0x3f0   : > { %v870_v54 = vrot.slane %v869_v46, 1  ;;  %v821_v55 = vrot.slane %v820_v47, 1  ;;  %v828_v56 = vrot.slane %v827_v48, 1  ;;  %v835_v57 = vrot.slane %v834_v49, 1 }
 0x3f1   : > { %v841_v58 = vmax.f32 %v839_v42, %v840_v50  ;;  %v848_v59 = vmax.f32 %v846_v43, %v847_v51  ;;  %v855_v60 = vmax.f32 %v853_v44, %v854_v52  ;;  %v862_v61 = vmax.f32 %v860_v45, %v861_v53  ;;  %v1301_v43 = vld [vmem:[#allocation3] ss:$0 sm:$0xff] }
 0x3f2   : > { %v871_v62 = vmax.f32 %v869_v46, %v870_v54  ;;  %v822_v63 = vmax.f32 %v820_v47, %v821_v55  ;;  %v829_v0 = vmax.f32 %v827_v48, %v828_v56  ;;  %v836_v1 = vmax.f32 %v834_v49, %v835_v57 }
 0x3f3   : > { %v842_v3 = vrot.slane %v841_v58, 1  ;;  %v849_v4 = vrot.slane %v848_v59, 1  ;;  %v856_v5 = vrot.slane %v855_v60, 1  ;;  %v863_v6 = vrot.slane %v862_v61, 1 }
 0x3f4   : > { %v872_v7 = vmax.f32 %v822_v63, -1e+30  ;;  %v873_v8 = vmax.f32 %v829_v0, -1e+30  ;;  %v879_v13 = vmax.f32 %v871_v62, -1e+30 }
 0x3f5   : > { %v843_v9 = vmax.f32 %v841_v58, %v842_v3  ;;  %v850_v10 = vmax.f32 %v848_v59, %v849_v4  ;;  %v857_v11 = vmax.f32 %v855_v60, %v856_v5  ;;  %v864_v12 = vmax.f32 %v862_v61, %v863_v6 }
 0x3f6   : > { %v874_v14 = vmax.f32 %v836_v1, -1e+30  ;;  %v885_v15 = vmul.f32 %v1300_v2, %v873_v8  ;;  %v884_v20 = vmul.f32 %v1300_v2, %v872_v7  ;;  %v891_v29 = vmul.f32 %v1300_v2, %v879_v13 }
 0x3f7   : > { %v875_v16 = vmax.f32 %v843_v9, -1e+30  ;;  %v876_v17 = vmax.f32 %v850_v10, -1e+30  ;;  %v877_v18 = vmax.f32 %v857_v11, -1e+30 }
 0x3f8   : > { %v878_v19 = vmax.f32 %v864_v12, -1e+30  ;;  %v886_v21 = vmul.f32 %v1300_v2, %v874_v14  ;;  %v900_v22 = vrot.slane %v885_v15, 7  ;;  %v918_v38 = vrot.slane %v891_v29, 1 }
 0x3f9   : > { %v887_v23 = vmul.f32 %v1300_v2, %v875_v16  ;;  %v888_v24 = vmul.f32 %v1300_v2, %v876_v17  ;;  %v889_v25 = vmul.f32 %v1300_v2, %v877_v18  ;;  %v1641_v42 = vmov 0  }
 0x3fa   : > { %v890_v26 = vmul.f32 %v1300_v2, %v878_v19  ;;  %v902_v27 = vsel %vm901_vm8, %v900_v22, %v884_v20  ;;  %v903_v28 = vrot.slane %v886_v21, 6  ;;  %1297 = vset.pattern.permute.xlu2 %v1641_v42  ;;  %1298 = vset.pattern.permute.xlu0 %v1641_v42 }
 0x3fb   : > { %v906_v30 = vrot.slane %v887_v23, 5  ;;  %v909_v32 = vrot.slane %v888_v24, 4  ;;  %v912_v34 = vrot.slane %v889_v25, 3 }
 0x3fc   : > { %v905_v31 = vsel %vm904_vm9, %v903_v28, %v902_v27  ;;  %v915_v36 = vrot.slane %v890_v26, 2 }
 0x3fd   : > { %v908_v33 = vsel %vm907_vm10, %v906_v30, %v905_v31 }
 0x3fe   : > { %v911_v35 = vsel %vm910_vm11, %v909_v32, %v908_v33 }
 0x3ff   : > { %v914_v37 = vsel %vm913_vm12, %v912_v34, %v911_v35 }
 0x400   : > { %v917_v39 = vsel %vm916_vm13, %v915_v36, %v914_v37 }
 0x401   : > { %v920_v40 = vsel %vm919_vm14, %v918_v38, %v917_v39 }
 0x402   : > { %v922_v41 = vsel %vm607_vm3, %v920_v40, 0.0 }
 0x403   : > { %923 = vadd.xlane.f32.xlu1 %v922_v41 }
 0x476   : > { %v924_v44 = vpop.xlane.xlu1 %923 }
 0x477   : > { %v929_v45 = vadd.f32 %v1301_v43, %v924_v44 }
 0x479   : > { %v1159_v46 = vmul.f32 -1.442695, %v929_v45 }
 0x47b   : > { %1302 = vpow2.f32 %v1159_v46 }
 0x481   : > { %v1303_v47 = vpop.eup %1302 }
 0x482   : > { %v933_v48 = vadd.f32 1.0, %v1303_v47 }
 0x484   : > { %1304 = vrcp.f32 %v933_v48  ;;  %v945_v52 = vand.u32 2147483648, %v933_v48  ;;  %v943_v54 = vand.u32 2147483647, %v933_v48  ;;  %vm939_vm0 = vweird.f32 %v933_v48 }
 0x486   : > { %v946_v56 = vor.u32 1.1754944e-38, %v945_v52  ;;  %vm944_vm2 = vcmp.eq.f32.partialorder %v943_v54, 8.507059e+37 }
 0x48a   : > { %v1305_v49 = vpop.eup %1304 }
 0x48b   : > { %v935_v50 = vmul.f32 %v1305_v49, %v933_v48  ;;  %vm940_vm15 = vweird.f32 %v1305_v49 }
 0x48c   : > { %vm941_vm1 = vmor %vm939_vm0, %vm940_vm15 }
 0x48d   : > { %v936_v51 = vsub.f32 1.0, %v935_v50 }
 0x48f   : > { %v937_v53 = vmul.f32 %v1305_v49, %v936_v51 }
 0x491   : > { %v938_v55 = vadd.f32 %v1305_v49, %v937_v53 }
 0x493   : > { %v942_v57 = vsel %vm941_vm1, %v1305_v49, %v938_v55 }
 0x494   : > { %v947_v58 = vsel %vm944_vm2, %v946_v56, %v942_v57 }
 0x495   : > { %951 = vperm.xlu2 %1297, %v947_v58  }
 0x4ef   : > { %v952_v59 = vpop.permute.xlu2 %951 }
 0x4f0   : > { %954 = vst [vmem:[#allocation16] sm:$0xff] %v952_v59 }
 0x4f1 PF: > { %p1239_p4 = scmp.eq.s32.totalorder %s1725_s9, 1  ;;  %s1642_s30 = smov [#allocation16]  }
 0x4f2   : > { %s961_s14 = sshll.u32 %s1642_s30, 4  ;;  %s1989_s15 = sld [smem:[#allocation29_spill]]  ;;  %s962_s14 = int_to_ptr.vmem [resolvable:$true] %s961_s14 }
 0x4f8   : > { %s963_s27 = sshll.u32 %s1989_s15, 4  ;;  %s964_s27 = int_to_ptr.hbm [resolvable:$true] %s963_s27 }
 0x4f9   : > { %1199 = dma.vmem_to_hbm [thread:$0]  (%p1239_p4), %s962_s14, 128, %s964_s27, [#allocation6]  }
 0x4fa   : > { %1611 = dma.done.wait (%p1239_p4), [#allocation6], 128  }
 0x4fb   : > { %1613 = vsyncadd (%p1239_p4), [#allocation6], 4294967168 }
 0x4fc PF: > { %s1990_s22 = sld [smem:[#allocation23_spill]]  ;;  %s1992_s19 = smov %s1620_s20 }
 0x4fd   : > { %s1991_s25 = sld [smem:[#allocation24_spill]]  ;;  %s1993_s20 = smov %s1624_s21 }
 0x502   : > { %p24_p5 = scmp.ge.s32.totalorder %s1990_s22, 4  }
 0x503   : > { %s1994_s21 = smov %s1991_s25 }
 0x504   :  { %26 = sbr.rel (!%p24_p5) target bundleno = 11 (0xb), region = 153 }
 0x509   :  { %977 = vsyncpa [#allocation5], 1 }
 0x50a   :  { %979 = vsyncpa [#allocation5 + $0x1], 1 }
 0x50b   :  { %980 = vsyncpa [#allocation8], 1 }
 0x50c   :  { %981 = vsyncpa [#allocation14], 1 }
 0x50d   :  { %982 = vsyncpa [#allocation6], 1 }
 0x50e   :  { %984 = vsyncpa [#allocation6 + $0x1], 1 }

</bundles_post_ra>
